<compile_context>
chip_gen: v6e
topology: v6e:2x2x1
jax: 0.10.0
libtpu: 0.0.40
codegen_flags: <defaults>
</compile_context>

<pallas_src>
import functools

import jax
import jax.numpy as jnp
from jax import lax
from jax.experimental import pallas as pl
from jax.experimental.pallas import tpu as pltpu


def _colorbranch_kernel(x_ref, masks_ref,
                        w1_ref, b1_ref, w2_ref, b2_ref,
                        w3_ref, b3_ref, w4_ref, b4_ref,
                        out_ref, c_ref, *, H, W, num, P):
    HW = H * W

    # ---- boundary masks: broadcast the (9, HW) table once per channel height ----
    m9 = masks_ref[...]                                  # (9, HW) f32, center row = 1

    def make_full_mask(cin):
        # (9*cin, HW): rows [t*cin:(t+1)*cin] carry the mask for tap t.
        return jnp.concatenate(
            [jnp.broadcast_to(m9[t:t + 1, :], (cin, HW)) for t in range(9)],
            axis=0)

    mask_num = make_full_mask(P * num)                   # layers with Cin = P*num
    mask_3 = make_full_mask(P * 3)                       # layer with   Cin = P*3

    def conv3x3(a, w, b, mfull):
        """3x3 'SAME' conv as a single matmul.

        a:     (Cin, HW)   activation slab (Cin already batch-packed)
        w:     (Cout, 9*Cin) folded (block-diagonal-per-image) weight
        b:     (Cout, 1)
        mfull: (9*Cin, HW) boundary mask
        """
        slabs = []
        for ky in range(3):
            for kx in range(3):
                s = (ky - 1) * W + (kx - 1)
                if s == 0:
                    slabs.append(a)
                else:
                    # a[ci, y*W+x] -> a[ci, (y+dy)*W+(x+dx)]  (XLU lane rotate)
                    slabs.append(pltpu.roll(a, shift=(-s) % HW, axis=1))
        stacked = jnp.concatenate(slabs, axis=0) * mfull          # (9*Cin, HW)
        return jnp.dot(w, stacked,
                       preferred_element_type=jnp.float32) + b    # (Cout, HW)

    x = x_ref[...].astype(jnp.float32)                   # (P*num, HW)

    # ---- downd: conv(num->num)+ReLU, conv(num->3)+Sigmoid ----
    h1 = jnp.maximum(conv3x3(x, w1_ref[...], b1_ref[...], mask_num), 0.0)
    z = conv3x3(h1, w2_ref[...], b2_ref[...], mask_num)
    c = pl.reciprocal(1.0 + jnp.exp(-z), approx=False)   # exact; keeps 2e-4 tol

    # ---- upd: conv(3->num)+ReLU, conv(num->num)+ReLU ----
    h2 = jnp.maximum(conv3x3(c, w3_ref[...], b3_ref[...], mask_3), 0.0)
    h3 = jnp.maximum(conv3x3(h2, w4_ref[...], b4_ref[...], mask_num), 0.0)

    # Residual re-read from VMEM (cheaper than keeping x live across 4 layers).
    out_ref[...] = (h3 + x_ref[...].astype(jnp.float32)).astype(out_ref.dtype)
    c_ref[...] = c.astype(c_ref.dtype)


def colorbranch_forward(x_nchw, params, *, images_per_step=2):
    """x_nchw: (B, num, H, W) f32. Returns (upd(downd(x)) + x, downd(x)) in NCHW."""
    w1, b1, w2, b2, w3, b3, w4, b4 = params              # HWIO weights, (Cout,) biases
    B, C, H, W = x_nchw.shape
    HW = H * W
    P = images_per_step

    # ---- pack P images per grid step on the sublane axis ----
    Bp = ((B + P - 1) // P) * P
    x2 = x_nchw.reshape(B, C, HW)
    if Bp != B:
        x2 = jnp.concatenate(
            [x2, jnp.zeros((Bp - B, C, HW), x2.dtype)], axis=0)
    xg = x2.reshape(Bp // P, P * C, HW)                  # image p -> rows [p*C:(p+1)*C]

    # ---- fold 9 taps into one (P*Cout, 9*P*Cin) block-diagonal matrix ----
    def fold_pack(w_hwio):
        cin, cout = w_hwio.shape[2], w_hwio.shape[3]
        taps = w_hwio.reshape(9, cin, cout)              # tap t = ky*3 + kx
        eye = jnp.eye(P, dtype=w_hwio.dtype)
        blocks = [jnp.kron(eye, taps[t].T) for t in range(9)]   # (P*cout, P*cin)
        return jnp.concatenate(blocks, axis=1)           # (P*cout, 9*P*cin)

    def pack_bias(b):
        return jnp.tile(b, P).reshape(-1, 1)             # (P*cout, 1)

    w1p, w2p, w3p, w4p = fold_pack(w1), fold_pack(w2), fold_pack(w3), fold_pack(w4)
    b1p, b2p, b3p, b4p = pack_bias(b1), pack_bias(b2), pack_bias(b3), pack_bias(b4)

    # ---- (9, HW) f32 boundary masks (center tap row = all ones) ----
    ys, xs = jnp.meshgrid(jnp.arange(H, dtype=jnp.int32),
                          jnp.arange(W, dtype=jnp.int32), indexing='ij')
    rows = []
    for ky in range(3):
        for kx in range(3):
            dy, dx = ky - 1, kx - 1
            valid = ((xs + dx >= 0) & (xs + dx <= W - 1) &
                     (ys + dy >= 0) & (ys + dy <= H - 1))
            rows.append(valid.reshape(-1))
    masks = jnp.stack(rows, axis=0).astype(jnp.float32)  # (9, HW)

    PC, P3 = P * C, P * 3
    kernel = functools.partial(_colorbranch_kernel, H=H, W=W, num=C, P=P)

    out_g, c_g = pl.pallas_call(
        kernel,
        out_shape=(jax.ShapeDtypeStruct((Bp // P, PC, HW), x_nchw.dtype),
                   jax.ShapeDtypeStruct((Bp // P, P3, HW), x_nchw.dtype)),
        grid=(Bp // P,),
        in_specs=[
            pl.BlockSpec((None, PC, HW), lambda g: (g, 0, 0)),   # x (packed)
            pl.BlockSpec((9, HW), lambda g: (0, 0)),             # masks
            pl.BlockSpec(w1p.shape, lambda g: (0, 0)),           # w1 folded
            pl.BlockSpec(b1p.shape, lambda g: (0, 0)),           # b1
            pl.BlockSpec(w2p.shape, lambda g: (0, 0)),           # w2 folded
            pl.BlockSpec(b2p.shape, lambda g: (0, 0)),           # b2
            pl.BlockSpec(w3p.shape, lambda g: (0, 0)),           # w3 folded
            pl.BlockSpec(b3p.shape, lambda g: (0, 0)),           # b3
            pl.BlockSpec(w4p.shape, lambda g: (0, 0)),           # w4 folded
            pl.BlockSpec(b4p.shape, lambda g: (0, 0)),           # b4
        ],
        out_specs=(pl.BlockSpec((None, PC, HW), lambda g: (g, 0, 0)),
                   pl.BlockSpec((None, P3, HW), lambda g: (g, 0, 0))),
        compiler_params=pltpu.CompilerParams(
            dimension_semantics=("parallel",)),
    )(xg, masks, w1p, b1p, w2p, b2p, w3p, b3p, w4p, b4p)

    out2 = out_g.reshape(Bp, C, HW)[:B]
    c2 = c_g.reshape(Bp, 3, HW)[:B]
    return out2.reshape(B, C, H, W), c2.reshape(B, 3, H, W)


# ---------------- pure-JAX reference (for correctness check) ----------------
def _conv_ref(x_nhwc, w, b):
    y = lax.conv_general_dilated(
        x_nhwc, w, window_strides=(1, 1), padding='SAME',
        dimension_numbers=('NHWC', 'HWIO', 'NHWC'))
    return y + b.reshape(1, 1, 1, -1)


def colorbranch_ref(x_nchw, params):
    w1, b1, w2, b2, w3, b3, w4, b4 = params
    x = jnp.transpose(x_nchw, (0, 2, 3, 1))
    h1 = jax.nn.relu(_conv_ref(x, w1, b1))
    c = jax.nn.sigmoid(_conv_ref(h1, w2, b2))
    h2 = jax.nn.relu(_conv_ref(c, w3, b3))
    h3 = jax.nn.relu(_conv_ref(h2, w4, b4))
    out = h3 + x
    return (jnp.transpose(out, (0, 3, 1, 2)), jnp.transpose(c, (0, 3, 1, 2)))


def init_params(key, num):
    ks = jax.random.split(key, 8)

    def wgt(k, cin, cout):
        return jax.random.normal(k, (3, 3, cin, cout), jnp.float32) * 0.1

    def bias(k, cout):
        return jax.random.normal(k, (cout,), jnp.float32) * 0.05

    w1, b1 = wgt(ks[0], num, num), bias(ks[1], num)
    w2, b2 = wgt(ks[2], num, 3), bias(ks[3], 3)
    w3, b3 = wgt(ks[4], 3, num), bias(ks[5], num)
    w4, b4 = wgt(ks[6], num, num), bias(ks[7], num)
    return (w1, b1, w2, b2, w3, b3, w4, b4)


if __name__ == "__main__":
    num = 4
    B, H, W = 2, 16, 16

    key = jax.random.PRNGKey(0)
    kx, kp = jax.random.split(key)
    x = jax.random.normal(kx, (B, num, H, W), jnp.float32)
    params = init_params(kp, num)

    out, c = colorbranch_forward(x, params)
    out = jax.block_until_ready(out)
    c = jax.block_until_ready(c)

    out_ref, c_ref = colorbranch_ref(x, params)
    assert out.shape == (B, num, H, W) and c.shape == (B, 3, H, W)
    assert jnp.allclose(out, out_ref, atol=2e-4, rtol=2e-4), "output mismatch"
    assert jnp.allclose(c, c_ref, atol=2e-4, rtol=2e-4), "color map mismatch"

    print("KERNEL_OK")
</pallas_src>

<mosaic_0001>
module attributes {stable_mosaic.version = 11 : i64} {
  func.func @_colorbranch_kernel(%arg0: i32, %arg1: memref<1x8x256xf32, #tpu.memory_space<vmem>>, %arg2: memref<9x256xf32, #tpu.memory_space<vmem>>, %arg3: memref<8x72xf32, #tpu.memory_space<vmem>>, %arg4: memref<8x1xf32, #tpu.memory_space<vmem>>, %arg5: memref<6x72xf32, #tpu.memory_space<vmem>>, %arg6: memref<6x1xf32, #tpu.memory_space<vmem>>, %arg7: memref<8x54xf32, #tpu.memory_space<vmem>>, %arg8: memref<8x1xf32, #tpu.memory_space<vmem>>, %arg9: memref<8x72xf32, #tpu.memory_space<vmem>>, %arg10: memref<8x1xf32, #tpu.memory_space<vmem>>, %arg11: memref<1x8x256xf32, #tpu.memory_space<vmem>>, %arg12: memref<1x6x256xf32, #tpu.memory_space<vmem>>) attributes {dimension_semantics = [#tpu.dimension_semantics<parallel>], iteration_bounds = array<i64: 1>, scalar_prefetch = 0 : i64, scratch_operands = 0 : i64, tpu.core_type = #tpu.core_type<tc>, window_params = [{transform_indices = @transform_0, window_bounds = array<i64: 1, 8, 256>}, {pipeline_mode = #tpu.pipeline_mode<synchronous>, transform_indices = @transform_1, window_bounds = array<i64: 9, 256>}, {pipeline_mode = #tpu.pipeline_mode<synchronous>, transform_indices = @transform_2, window_bounds = array<i64: 8, 72>}, {pipeline_mode = #tpu.pipeline_mode<synchronous>, transform_indices = @transform_3, window_bounds = array<i64: 8, 1>}, {pipeline_mode = #tpu.pipeline_mode<synchronous>, transform_indices = @transform_4, window_bounds = array<i64: 6, 72>}, {pipeline_mode = #tpu.pipeline_mode<synchronous>, transform_indices = @transform_5, window_bounds = array<i64: 6, 1>}, {pipeline_mode = #tpu.pipeline_mode<synchronous>, transform_indices = @transform_6, window_bounds = array<i64: 8, 54>}, {pipeline_mode = #tpu.pipeline_mode<synchronous>, transform_indices = @transform_7, window_bounds = array<i64: 8, 1>}, {pipeline_mode = #tpu.pipeline_mode<synchronous>, transform_indices = @transform_8, window_bounds = array<i64: 8, 72>}, {pipeline_mode = #tpu.pipeline_mode<synchronous>, transform_indices = @transform_9, window_bounds = array<i64: 8, 1>}, {transform_indices = @transform_10, window_bounds = array<i64: 1, 8, 256>}, {transform_indices = @transform_11, window_bounds = array<i64: 1, 6, 256>}]} {
    %c0 = arith.constant 0 : index
    %c0_0 = arith.constant 0 : index
    %0 = vector.load %arg2[%c0, %c0_0] : memref<9x256xf32, #tpu.memory_space<vmem>>, vector<9x256xf32>
    %1 = vector.extract_strided_slice %0 {offsets = [0, 0], sizes = [1, 256], strides = [1, 1]} : vector<9x256xf32> to vector<1x256xf32>
    %2 = vector.shape_cast %1 : vector<1x256xf32> to vector<1x256xf32>
    %3 = vector.broadcast %2 : vector<1x256xf32> to vector<8x256xf32>
    %4 = vector.extract_strided_slice %0 {offsets = [1, 0], sizes = [1, 256], strides = [1, 1]} : vector<9x256xf32> to vector<1x256xf32>
    %5 = vector.shape_cast %4 : vector<1x256xf32> to vector<1x256xf32>
    %6 = vector.broadcast %5 : vector<1x256xf32> to vector<8x256xf32>
    %7 = vector.extract_strided_slice %0 {offsets = [2, 0], sizes = [1, 256], strides = [1, 1]} : vector<9x256xf32> to vector<1x256xf32>
    %8 = vector.shape_cast %7 : vector<1x256xf32> to vector<1x256xf32>
    %9 = vector.broadcast %8 : vector<1x256xf32> to vector<8x256xf32>
    %10 = vector.extract_strided_slice %0 {offsets = [3, 0], sizes = [1, 256], strides = [1, 1]} : vector<9x256xf32> to vector<1x256xf32>
    %11 = vector.shape_cast %10 : vector<1x256xf32> to vector<1x256xf32>
    %12 = vector.broadcast %11 : vector<1x256xf32> to vector<8x256xf32>
    %13 = vector.extract_strided_slice %0 {offsets = [4, 0], sizes = [1, 256], strides = [1, 1]} : vector<9x256xf32> to vector<1x256xf32>
    %14 = vector.shape_cast %13 : vector<1x256xf32> to vector<1x256xf32>
    %15 = vector.broadcast %14 : vector<1x256xf32> to vector<8x256xf32>
    %16 = vector.extract_strided_slice %0 {offsets = [5, 0], sizes = [1, 256], strides = [1, 1]} : vector<9x256xf32> to vector<1x256xf32>
    %17 = vector.shape_cast %16 : vector<1x256xf32> to vector<1x256xf32>
    %18 = vector.broadcast %17 : vector<1x256xf32> to vector<8x256xf32>
    %19 = vector.extract_strided_slice %0 {offsets = [6, 0], sizes = [1, 256], strides = [1, 1]} : vector<9x256xf32> to vector<1x256xf32>
    %20 = vector.shape_cast %19 : vector<1x256xf32> to vector<1x256xf32>
    %21 = vector.broadcast %20 : vector<1x256xf32> to vector<8x256xf32>
    %22 = vector.extract_strided_slice %0 {offsets = [7, 0], sizes = [1, 256], strides = [1, 1]} : vector<9x256xf32> to vector<1x256xf32>
    %23 = vector.shape_cast %22 : vector<1x256xf32> to vector<1x256xf32>
    %24 = vector.broadcast %23 : vector<1x256xf32> to vector<8x256xf32>
    %25 = vector.extract_strided_slice %0 {offsets = [8, 0], sizes = [1, 256], strides = [1, 1]} : vector<9x256xf32> to vector<1x256xf32>
    %26 = vector.shape_cast %25 : vector<1x256xf32> to vector<1x256xf32>
    %27 = vector.broadcast %26 : vector<1x256xf32> to vector<8x256xf32>
    %28 = tpu.concatenate %3, %6, %9, %12, %15, %18, %21, %24, %27 in 0 : vector<8x256xf32>, vector<8x256xf32>, vector<8x256xf32>, vector<8x256xf32>, vector<8x256xf32>, vector<8x256xf32>, vector<8x256xf32>, vector<8x256xf32>, vector<8x256xf32> -> vector<72x256xf32>
    %29 = vector.extract_strided_slice %0 {offsets = [0, 0], sizes = [1, 256], strides = [1, 1]} : vector<9x256xf32> to vector<1x256xf32>
    %30 = vector.shape_cast %29 : vector<1x256xf32> to vector<1x256xf32>
    %31 = vector.broadcast %30 : vector<1x256xf32> to vector<6x256xf32>
    %32 = vector.extract_strided_slice %0 {offsets = [1, 0], sizes = [1, 256], strides = [1, 1]} : vector<9x256xf32> to vector<1x256xf32>
    %33 = vector.shape_cast %32 : vector<1x256xf32> to vector<1x256xf32>
    %34 = vector.broadcast %33 : vector<1x256xf32> to vector<6x256xf32>
    %35 = vector.extract_strided_slice %0 {offsets = [2, 0], sizes = [1, 256], strides = [1, 1]} : vector<9x256xf32> to vector<1x256xf32>
    %36 = vector.shape_cast %35 : vector<1x256xf32> to vector<1x256xf32>
    %37 = vector.broadcast %36 : vector<1x256xf32> to vector<6x256xf32>
    %38 = vector.extract_strided_slice %0 {offsets = [3, 0], sizes = [1, 256], strides = [1, 1]} : vector<9x256xf32> to vector<1x256xf32>
    %39 = vector.shape_cast %38 : vector<1x256xf32> to vector<1x256xf32>
    %40 = vector.broadcast %39 : vector<1x256xf32> to vector<6x256xf32>
    %41 = vector.extract_strided_slice %0 {offsets = [4, 0], sizes = [1, 256], strides = [1, 1]} : vector<9x256xf32> to vector<1x256xf32>
    %42 = vector.shape_cast %41 : vector<1x256xf32> to vector<1x256xf32>
    %43 = vector.broadcast %42 : vector<1x256xf32> to vector<6x256xf32>
    %44 = vector.extract_strided_slice %0 {offsets = [5, 0], sizes = [1, 256], strides = [1, 1]} : vector<9x256xf32> to vector<1x256xf32>
    %45 = vector.shape_cast %44 : vector<1x256xf32> to vector<1x256xf32>
    %46 = vector.broadcast %45 : vector<1x256xf32> to vector<6x256xf32>
    %47 = vector.extract_strided_slice %0 {offsets = [6, 0], sizes = [1, 256], strides = [1, 1]} : vector<9x256xf32> to vector<1x256xf32>
    %48 = vector.shape_cast %47 : vector<1x256xf32> to vector<1x256xf32>
    %49 = vector.broadcast %48 : vector<1x256xf32> to vector<6x256xf32>
    %50 = vector.extract_strided_slice %0 {offsets = [7, 0], sizes = [1, 256], strides = [1, 1]} : vector<9x256xf32> to vector<1x256xf32>
    %51 = vector.shape_cast %50 : vector<1x256xf32> to vector<1x256xf32>
    %52 = vector.broadcast %51 : vector<1x256xf32> to vector<6x256xf32>
    %53 = vector.extract_strided_slice %0 {offsets = [8, 0], sizes = [1, 256], strides = [1, 1]} : vector<9x256xf32> to vector<1x256xf32>
    %54 = vector.shape_cast %53 : vector<1x256xf32> to vector<1x256xf32>
    %55 = vector.broadcast %54 : vector<1x256xf32> to vector<6x256xf32>
    %56 = tpu.concatenate %31, %34, %37, %40, %43, %46, %49, %52, %55 in 0 : vector<6x256xf32>, vector<6x256xf32>, vector<6x256xf32>, vector<6x256xf32>, vector<6x256xf32>, vector<6x256xf32>, vector<6x256xf32>, vector<6x256xf32>, vector<6x256xf32> -> vector<54x256xf32>
    %c0_1 = arith.constant 0 : index
    %c0_2 = arith.constant 0 : index
    %c0_3 = arith.constant 0 : index
    %57 = vector.load %arg1[%c0_1, %c0_2, %c0_3] : memref<1x8x256xf32, #tpu.memory_space<vmem>>, vector<1x8x256xf32>
    %58 = vector.shape_cast %57 : vector<1x8x256xf32> to vector<8x256xf32>
    %c0_4 = arith.constant 0 : index
    %c0_5 = arith.constant 0 : index
    %59 = vector.load %arg3[%c0_4, %c0_5] : memref<8x72xf32, #tpu.memory_space<vmem>>, vector<8x72xf32>
    %c0_6 = arith.constant 0 : index
    %c0_7 = arith.constant 0 : index
    %60 = vector.load %arg4[%c0_6, %c0_7] : memref<8x1xf32, #tpu.memory_space<vmem>>, vector<8x1xf32>
    %c17_i32 = arith.constant 17 : i32
    %61 = tpu.dynamic_rotate %58 by %c17_i32 dim 1 : vector<8x256xf32>, i32 -> vector<8x256xf32>
    %c16_i32 = arith.constant 16 : i32
    %62 = tpu.dynamic_rotate %58 by %c16_i32 dim 1 : vector<8x256xf32>, i32 -> vector<8x256xf32>
    %c15_i32 = arith.constant 15 : i32
    %63 = tpu.dynamic_rotate %58 by %c15_i32 dim 1 : vector<8x256xf32>, i32 -> vector<8x256xf32>
    %c1_i32 = arith.constant 1 : i32
    %64 = tpu.dynamic_rotate %58 by %c1_i32 dim 1 : vector<8x256xf32>, i32 -> vector<8x256xf32>
    %c255_i32 = arith.constant 255 : i32
    %65 = tpu.dynamic_rotate %58 by %c255_i32 dim 1 : vector<8x256xf32>, i32 -> vector<8x256xf32>
    %c241_i32 = arith.constant 241 : i32
    %66 = tpu.dynamic_rotate %58 by %c241_i32 dim 1 : vector<8x256xf32>, i32 -> vector<8x256xf32>
    %c240_i32 = arith.constant 240 : i32
    %67 = tpu.dynamic_rotate %58 by %c240_i32 dim 1 : vector<8x256xf32>, i32 -> vector<8x256xf32>
    %c239_i32 = arith.constant 239 : i32
    %68 = tpu.dynamic_rotate %58 by %c239_i32 dim 1 : vector<8x256xf32>, i32 -> vector<8x256xf32>
    %69 = tpu.concatenate %61, %62, %63, %64, %58, %65, %66, %67, %68 in 0 : vector<8x256xf32>, vector<8x256xf32>, vector<8x256xf32>, vector<8x256xf32>, vector<8x256xf32>, vector<8x256xf32>, vector<8x256xf32>, vector<8x256xf32>, vector<8x256xf32> -> vector<72x256xf32>
    %70 = arith.mulf %69, %28 : vector<72x256xf32>
    %cst = arith.constant dense<0.000000e+00> : vector<8x256xf32>
    %71 = tpu.matmul %59, %70, %cst {dimension_numbers = #tpu.dot_dimension_numbers<[1], [0], [0], [1], [0, 0, 1, 1], [], []>} : vector<8x72xf32>, vector<72x256xf32>, vector<8x256xf32> -> vector<8x256xf32>
    %72 = vector.broadcast %60 : vector<8x1xf32> to vector<8x256xf32>
    %73 = arith.addf %71, %72 : vector<8x256xf32>
    %cst_8 = arith.constant 0.000000e+00 : f32
    %74 = vector.broadcast %cst_8 : f32 to vector<8x256xf32>
    %75 = arith.maximumf %73, %74 : vector<8x256xf32>
    %c0_9 = arith.constant 0 : index
    %c0_10 = arith.constant 0 : index
    %76 = vector.load %arg5[%c0_9, %c0_10] : memref<6x72xf32, #tpu.memory_space<vmem>>, vector<6x72xf32>
    %c0_11 = arith.constant 0 : index
    %c0_12 = arith.constant 0 : index
    %77 = vector.load %arg6[%c0_11, %c0_12] : memref<6x1xf32, #tpu.memory_space<vmem>>, vector<6x1xf32>
    %c17_i32_13 = arith.constant 17 : i32
    %78 = tpu.dynamic_rotate %75 by %c17_i32_13 dim 1 : vector<8x256xf32>, i32 -> vector<8x256xf32>
    %c16_i32_14 = arith.constant 16 : i32
    %79 = tpu.dynamic_rotate %75 by %c16_i32_14 dim 1 : vector<8x256xf32>, i32 -> vector<8x256xf32>
    %c15_i32_15 = arith.constant 15 : i32
    %80 = tpu.dynamic_rotate %75 by %c15_i32_15 dim 1 : vector<8x256xf32>, i32 -> vector<8x256xf32>
    %c1_i32_16 = arith.constant 1 : i32
    %81 = tpu.dynamic_rotate %75 by %c1_i32_16 dim 1 : vector<8x256xf32>, i32 -> vector<8x256xf32>
    %c255_i32_17 = arith.constant 255 : i32
    %82 = tpu.dynamic_rotate %75 by %c255_i32_17 dim 1 : vector<8x256xf32>, i32 -> vector<8x256xf32>
    %c241_i32_18 = arith.constant 241 : i32
    %83 = tpu.dynamic_rotate %75 by %c241_i32_18 dim 1 : vector<8x256xf32>, i32 -> vector<8x256xf32>
    %c240_i32_19 = arith.constant 240 : i32
    %84 = tpu.dynamic_rotate %75 by %c240_i32_19 dim 1 : vector<8x256xf32>, i32 -> vector<8x256xf32>
    %c239_i32_20 = arith.constant 239 : i32
    %85 = tpu.dynamic_rotate %75 by %c239_i32_20 dim 1 : vector<8x256xf32>, i32 -> vector<8x256xf32>
    %86 = tpu.concatenate %78, %79, %80, %81, %75, %82, %83, %84, %85 in 0 : vector<8x256xf32>, vector<8x256xf32>, vector<8x256xf32>, vector<8x256xf32>, vector<8x256xf32>, vector<8x256xf32>, vector<8x256xf32>, vector<8x256xf32>, vector<8x256xf32> -> vector<72x256xf32>
    %87 = arith.mulf %86, %28 : vector<72x256xf32>
    %cst_21 = arith.constant dense<0.000000e+00> : vector<6x256xf32>
    %88 = tpu.matmul %76, %87, %cst_21 {dimension_numbers = #tpu.dot_dimension_numbers<[1], [0], [0], [1], [0, 0, 1, 1], [], []>} : vector<6x72xf32>, vector<72x256xf32>, vector<6x256xf32> -> vector<6x256xf32>
    %89 = vector.broadcast %77 : vector<6x1xf32> to vector<6x256xf32>
    %90 = arith.addf %88, %89 : vector<6x256xf32>
    %cst_22 = arith.constant 0.000000e+00 : f32
    %91 = vector.broadcast %cst_22 : f32 to vector<6x256xf32>
    %92 = arith.subf %91, %90 : vector<6x256xf32>
    %93 = math.exp %92 : vector<6x256xf32>
    %cst_23 = arith.constant 1.000000e+00 : f32
    %94 = vector.broadcast %cst_23 : f32 to vector<6x256xf32>
    %95 = arith.addf %94, %93 : vector<6x256xf32>
    %96 = tpu.reciprocal %95 : vector<6x256xf32> -> vector<6x256xf32>
    %c0_24 = arith.constant 0 : index
    %c0_25 = arith.constant 0 : index
    %97 = vector.load %arg7[%c0_24, %c0_25] : memref<8x54xf32, #tpu.memory_space<vmem>>, vector<8x54xf32>
    %c0_26 = arith.constant 0 : index
    %c0_27 = arith.constant 0 : index
    %98 = vector.load %arg8[%c0_26, %c0_27] : memref<8x1xf32, #tpu.memory_space<vmem>>, vector<8x1xf32>
    %c17_i32_28 = arith.constant 17 : i32
    %99 = tpu.dynamic_rotate %96 by %c17_i32_28 dim 1 : vector<6x256xf32>, i32 -> vector<6x256xf32>
    %c16_i32_29 = arith.constant 16 : i32
    %100 = tpu.dynamic_rotate %96 by %c16_i32_29 dim 1 : vector<6x256xf32>, i32 -> vector<6x256xf32>
    %c15_i32_30 = arith.constant 15 : i32
    %101 = tpu.dynamic_rotate %96 by %c15_i32_30 dim 1 : vector<6x256xf32>, i32 -> vector<6x256xf32>
    %c1_i32_31 = arith.constant 1 : i32
    %102 = tpu.dynamic_rotate %96 by %c1_i32_31 dim 1 : vector<6x256xf32>, i32 -> vector<6x256xf32>
    %c255_i32_32 = arith.constant 255 : i32
    %103 = tpu.dynamic_rotate %96 by %c255_i32_32 dim 1 : vector<6x256xf32>, i32 -> vector<6x256xf32>
    %c241_i32_33 = arith.constant 241 : i32
    %104 = tpu.dynamic_rotate %96 by %c241_i32_33 dim 1 : vector<6x256xf32>, i32 -> vector<6x256xf32>
    %c240_i32_34 = arith.constant 240 : i32
    %105 = tpu.dynamic_rotate %96 by %c240_i32_34 dim 1 : vector<6x256xf32>, i32 -> vector<6x256xf32>
    %c239_i32_35 = arith.constant 239 : i32
    %106 = tpu.dynamic_rotate %96 by %c239_i32_35 dim 1 : vector<6x256xf32>, i32 -> vector<6x256xf32>
    %107 = tpu.concatenate %99, %100, %101, %102, %96, %103, %104, %105, %106 in 0 : vector<6x256xf32>, vector<6x256xf32>, vector<6x256xf32>, vector<6x256xf32>, vector<6x256xf32>, vector<6x256xf32>, vector<6x256xf32>, vector<6x256xf32>, vector<6x256xf32> -> vector<54x256xf32>
    %108 = arith.mulf %107, %56 : vector<54x256xf32>
    %cst_36 = arith.constant dense<0.000000e+00> : vector<8x256xf32>
    %109 = tpu.matmul %97, %108, %cst_36 {dimension_numbers = #tpu.dot_dimension_numbers<[1], [0], [0], [1], [0, 0, 1, 1], [], []>} : vector<8x54xf32>, vector<54x256xf32>, vector<8x256xf32> -> vector<8x256xf32>
    %110 = vector.broadcast %98 : vector<8x1xf32> to vector<8x256xf32>
    %111 = arith.addf %109, %110 : vector<8x256xf32>
    %cst_37 = arith.constant 0.000000e+00 : f32
    %112 = vector.broadcast %cst_37 : f32 to vector<8x256xf32>
    %113 = arith.maximumf %111, %112 : vector<8x256xf32>
    %c0_38 = arith.constant 0 : index
    %c0_39 = arith.constant 0 : index
    %114 = vector.load %arg9[%c0_38, %c0_39] : memref<8x72xf32, #tpu.memory_space<vmem>>, vector<8x72xf32>
    %c0_40 = arith.constant 0 : index
    %c0_41 = arith.constant 0 : index
    %115 = vector.load %arg10[%c0_40, %c0_41] : memref<8x1xf32, #tpu.memory_space<vmem>>, vector<8x1xf32>
    %c17_i32_42 = arith.constant 17 : i32
    %116 = tpu.dynamic_rotate %113 by %c17_i32_42 dim 1 : vector<8x256xf32>, i32 -> vector<8x256xf32>
    %c16_i32_43 = arith.constant 16 : i32
    %117 = tpu.dynamic_rotate %113 by %c16_i32_43 dim 1 : vector<8x256xf32>, i32 -> vector<8x256xf32>
    %c15_i32_44 = arith.constant 15 : i32
    %118 = tpu.dynamic_rotate %113 by %c15_i32_44 dim 1 : vector<8x256xf32>, i32 -> vector<8x256xf32>
    %c1_i32_45 = arith.constant 1 : i32
    %119 = tpu.dynamic_rotate %113 by %c1_i32_45 dim 1 : vector<8x256xf32>, i32 -> vector<8x256xf32>
    %c255_i32_46 = arith.constant 255 : i32
    %120 = tpu.dynamic_rotate %113 by %c255_i32_46 dim 1 : vector<8x256xf32>, i32 -> vector<8x256xf32>
    %c241_i32_47 = arith.constant 241 : i32
    %121 = tpu.dynamic_rotate %113 by %c241_i32_47 dim 1 : vector<8x256xf32>, i32 -> vector<8x256xf32>
    %c240_i32_48 = arith.constant 240 : i32
    %122 = tpu.dynamic_rotate %113 by %c240_i32_48 dim 1 : vector<8x256xf32>, i32 -> vector<8x256xf32>
    %c239_i32_49 = arith.constant 239 : i32
    %123 = tpu.dynamic_rotate %113 by %c239_i32_49 dim 1 : vector<8x256xf32>, i32 -> vector<8x256xf32>
    %124 = tpu.concatenate %116, %117, %118, %119, %113, %120, %121, %122, %123 in 0 : vector<8x256xf32>, vector<8x256xf32>, vector<8x256xf32>, vector<8x256xf32>, vector<8x256xf32>, vector<8x256xf32>, vector<8x256xf32>, vector<8x256xf32>, vector<8x256xf32> -> vector<72x256xf32>
    %125 = arith.mulf %124, %28 : vector<72x256xf32>
    %cst_50 = arith.constant dense<0.000000e+00> : vector<8x256xf32>
    %126 = tpu.matmul %114, %125, %cst_50 {dimension_numbers = #tpu.dot_dimension_numbers<[1], [0], [0], [1], [0, 0, 1, 1], [], []>} : vector<8x72xf32>, vector<72x256xf32>, vector<8x256xf32> -> vector<8x256xf32>
    %127 = vector.broadcast %115 : vector<8x1xf32> to vector<8x256xf32>
    %128 = arith.addf %126, %127 : vector<8x256xf32>
    %cst_51 = arith.constant 0.000000e+00 : f32
    %129 = vector.broadcast %cst_51 : f32 to vector<8x256xf32>
    %130 = arith.maximumf %128, %129 : vector<8x256xf32>
    %c0_52 = arith.constant 0 : index
    %c0_53 = arith.constant 0 : index
    %c0_54 = arith.constant 0 : index
    %131 = vector.load %arg1[%c0_52, %c0_53, %c0_54] : memref<1x8x256xf32, #tpu.memory_space<vmem>>, vector<1x8x256xf32>
    %132 = vector.shape_cast %131 : vector<1x8x256xf32> to vector<8x256xf32>
    %133 = arith.addf %130, %132 : vector<8x256xf32>
    %c0_55 = arith.constant 0 : index
    %c0_56 = arith.constant 0 : index
    %c0_57 = arith.constant 0 : index
    %134 = vector.load %arg11[%c0_55, %c0_56, %c0_57] : memref<1x8x256xf32, #tpu.memory_space<vmem>>, vector<1x8x256xf32>
    %135 = vector.shape_cast %134 : vector<1x8x256xf32> to vector<8x256xf32>
    %136 = vector.shape_cast %133 : vector<8x256xf32> to vector<1x8x256xf32>
    tpu.vector_store %arg11[%c0_55, %c0_56, %c0_57], %136 {strides = array<i32>} : memref<1x8x256xf32, #tpu.memory_space<vmem>>, vector<1x8x256xf32>,
    %c0_58 = arith.constant 0 : index
    %c0_59 = arith.constant 0 : index
    %c0_60 = arith.constant 0 : index
    %137 = vector.load %arg12[%c0_58, %c0_59, %c0_60] : memref<1x6x256xf32, #tpu.memory_space<vmem>>, vector<1x6x256xf32>
    %138 = vector.shape_cast %137 : vector<1x6x256xf32> to vector<6x256xf32>
    %139 = vector.shape_cast %96 : vector<6x256xf32> to vector<1x6x256xf32>
    tpu.vector_store %arg12[%c0_58, %c0_59, %c0_60], %139 {strides = array<i32>} : memref<1x6x256xf32, #tpu.memory_space<vmem>>, vector<1x6x256xf32>,
    return
  }
  func.func @transform_0(%arg0: i32) -> (i32, i32, i32) {
    %c0_i32 = arith.constant 0 : i32
    %c0_i32_0 = arith.constant 0 : i32
    %c0_i32_1 = arith.constant 0 : i32
    return %arg0, %c0_i32, %c0_i32_0 : i32, i32, i32
  }
  func.func @transform_1(%arg0: i32) -> (i32, i32) {
    %c0_i32 = arith.constant 0 : i32
    %c0_i32_0 = arith.constant 0 : i32
    %c0_i32_1 = arith.constant 0 : i32
    return %c0_i32, %c0_i32_0 : i32, i32
  }
  func.func @transform_2(%arg0: i32) -> (i32, i32) {
    %c0_i32 = arith.constant 0 : i32
    %c0_i32_0 = arith.constant 0 : i32
    %c0_i32_1 = arith.constant 0 : i32
    return %c0_i32, %c0_i32_0 : i32, i32
  }
  func.func @transform_3(%arg0: i32) -> (i32, i32) {
    %c0_i32 = arith.constant 0 : i32
    %c0_i32_0 = arith.constant 0 : i32
    %c0_i32_1 = arith.constant 0 : i32
    return %c0_i32, %c0_i32_0 : i32, i32
  }
  func.func @transform_4(%arg0: i32) -> (i32, i32) {
    %c0_i32 = arith.constant 0 : i32
    %c0_i32_0 = arith.constant 0 : i32
    %c0_i32_1 = arith.constant 0 : i32
    return %c0_i32, %c0_i32_0 : i32, i32
  }
  func.func @transform_5(%arg0: i32) -> (i32, i32) {
    %c0_i32 = arith.constant 0 : i32
    %c0_i32_0 = arith.constant 0 : i32
    %c0_i32_1 = arith.constant 0 : i32
    return %c0_i32, %c0_i32_0 : i32, i32
  }
  func.func @transform_6(%arg0: i32) -> (i32, i32) {
    %c0_i32 = arith.constant 0 : i32
    %c0_i32_0 = arith.constant 0 : i32
    %c0_i32_1 = arith.constant 0 : i32
    return %c0_i32, %c0_i32_0 : i32, i32
  }
  func.func @transform_7(%arg0: i32) -> (i32, i32) {
    %c0_i32 = arith.constant 0 : i32
    %c0_i32_0 = arith.constant 0 : i32
    %c0_i32_1 = arith.constant 0 : i32
    return %c0_i32, %c0_i32_0 : i32, i32
  }
  func.func @transform_8(%arg0: i32) -> (i32, i32) {
    %c0_i32 = arith.constant 0 : i32
    %c0_i32_0 = arith.constant 0 : i32
    %c0_i32_1 = arith.constant 0 : i32
    return %c0_i32, %c0_i32_0 : i32, i32
  }
  func.func @transform_9(%arg0: i32) -> (i32, i32) {
    %c0_i32 = arith.constant 0 : i32
    %c0_i32_0 = arith.constant 0 : i32
    %c0_i32_1 = arith.constant 0 : i32
    return %c0_i32, %c0_i32_0 : i32, i32
  }
  func.func @transform_10(%arg0: i32) -> (i32, i32, i32) {
    %c0_i32 = arith.constant 0 : i32
    %c0_i32_0 = arith.constant 0 : i32
    %c0_i32_1 = arith.constant 0 : i32
    return %arg0, %c0_i32, %c0_i32_0 : i32, i32, i32
  }
  func.func @transform_11(%arg0: i32) -> (i32, i32, i32) {
    %c0_i32 = arith.constant 0 : i32
    %c0_i32_0 = arith.constant 0 : i32
    %c0_i32_1 = arith.constant 0 : i32
    return %arg0, %c0_i32, %c0_i32_0 : i32, i32, i32
  }
}

</mosaic_0001>

<bundles_post_ra>
// kernel: tpu_custom_call.1
= control target key start
LH: loop header
LB: loop body
LE: loop exit
PB: predicated region body
PF: predicated region fallthrough
CT: control target
= control target key end

     0   :  { %17 = vsyncpa [#allocation3], 0  ;;  %s1527_s0 = inlined_call_operand.hbm [shape: f32[1,8,256], index: 0, kind: input, shape index: {}]   ;;  %s1528_s1 = inlined_call_operand.vmem [shape: f32[9,256], index: 1, kind: input, shape index: {}]   ;;  %s1529_s2 = inlined_call_operand.hbm [shape: f32[8,72], index: 2, kind: input, shape index: {}]   ;;  %s1530_s3 = inlined_call_operand.vmem [shape: f32[8,1], index: 3, kind: input, shape index: {}]   ;;  %s1531_s4 = inlined_call_operand.vmem [shape: f32[6,72], index: 4, kind: input, shape index: {}]   ;;  %s1532_s5 = inlined_call_operand.vmem [shape: f32[6,1], index: 5, kind: input, shape index: {}]   ;;  %s1533_s6 = inlined_call_operand.hbm [shape: f32[8,54], index: 6, kind: input, shape index: {}]   ;;  %s1534_s7 = inlined_call_operand.vmem [shape: f32[8,1], index: 7, kind: input, shape index: {}]   ;;  %s1535_s8 = inlined_call_operand.vmem [shape: f32[8,72], index: 8, kind: input, shape index: {}]   ;;  %s1536_s9 = inlined_call_operand.vmem [shape: f32[8,1], index: 9, kind: input, shape index: {}]   ;;  %s1537_s10 = inlined_call_operand.hbm [shape: f32[1,8,256], index: 10, kind: output, shape index: {0}]   ;;  %s1538_s11 = inlined_call_operand.vmem [shape: f32[1,6,256], index: 11, kind: output, shape index: {1}]  }
   0x1   :  { %18 = vsyncpa [#allocation6], 0 }
   0x2   :  { %19 = vsyncpa [#allocation4], 0  ;;  %s976_s17 = smov [#allocation5]   ;;  %s977_s19 = smov [#allocation2]  }
   0x3   :  { %s38_s18 = sshll.u32 %s976_s17, 4  ;;  %s26_s20 = sshll.u32 %s977_s19, 4  ;;  %s39_s18 = int_to_ptr.vmem [resolvable:$true] %s38_s18  ;;  %s27_s20 = int_to_ptr.vmem [resolvable:$true] %s26_s20 }
   0x4   :  { %s898_s21 = scalar_lea.vmem %s39_s18, 128  ;;  %p903_p1 = scmp.lt.s32.totalorder %s39_s18, %s39_s18 }
   0x5   :  { %p899_p0 = scmp.ne.s32.totalorder %s39_s18, %s898_s21  ;;  %p904_p2 = scmp.lt.s32.totalorder %s898_s21, %s898_s21 }
   0x7   :  { %p905_p3 = por %p904_p2, %p903_p1 }
   0x9   :  { %p906_p4 = pnand %p905_p3, %p899_p0 }
   0xb   :  { %909 = shalt.err (!%p906_p4)
}
   0xc   :  { %41 = dma.hbm_to_vmem [thread:$0]  %s1529_s2, 128, %s39_s18, [#allocation6]  }
   0xd   :  { %s918_s24 = scalar_lea.vmem %s27_s20, 256  ;;  %p923_p6 = scmp.lt.s32.totalorder %s27_s20, %s27_s20 }
   0xe   :  { %p919_p5 = scmp.ne.s32.totalorder %s27_s20, %s918_s24  ;;  %p924_p7 = scmp.lt.s32.totalorder %s918_s24, %s918_s24 }
  0x10   :  { %p925_p8 = por %p924_p7, %p923_p6 }
  0x12   :  { %p926_p9 = pnand %p925_p8, %p919_p5 }
  0x14   :  { %929 = shalt.err (!%p926_p9)
}
  0x15   :  { %29 = dma.hbm_to_vmem [thread:$0]  %s1527_s0, 256, %s27_s20, [#allocation3]  }
  0x16   :  { %s978_s27 = smov [#allocation7]  }
  0x17   :  { %s54_s28 = sshll.u32 %s978_s27, 4  ;;  %s55_s28 = int_to_ptr.vmem [resolvable:$true] %s54_s28 }
  0x18   :  { %s938_s29 = scalar_lea.vmem %s55_s28, 128  ;;  %p943_p11 = scmp.lt.s32.totalorder %s55_s28, %s55_s28 }
  0x19   :  { %p939_p10 = scmp.ne.s32.totalorder %s55_s28, %s938_s29  ;;  %p944_p12 = scmp.lt.s32.totalorder %s938_s29, %s938_s29 }
  0x1b   :  { %p945_p13 = por %p944_p12, %p943_p11 }
  0x1d   :  { %p946_p0 = pnand %p945_p13, %p939_p10 }
  0x1f   :  { %949 = shalt.err (!%p946_p0)
}
  0x20   :  { %57 = dma.hbm_to_vmem [thread:$0]  %s1533_s6, 128, %s55_s28, [#allocation6]  }
  0x21   :  { %970 = dma.done.wait [#allocation3], 256  }
  0x22   :  { %971 = vsyncadd [#allocation3], 4294967040 }
  0x23   :  { %972 = dma.done.wait [#allocation6], 256  }
  0x24   :  { %973 = vsyncadd [#allocation6], 4294967040  ;;  %v1059_v0 = vld [vmem:[#allocation2] sm:$0xff]  ;;  %s979_s0 = smov 112   ;;  %s980_s12 = smov 111   ;;  %v1065_v1 = vld [vmem:[#allocation2 + $0x8] sm:$0xff]  ;;  %v77_v5 = vlaneseq }
  0x25   :  { %212 = vrot.lane.b32.xlu1 %v1059_v0, %s979_s0  ;;  %219 = vrot.lane.b32.xlu0 %v1059_v0, %s980_s12  ;;  %s981_s6 = smov 113   ;;  %s982_s13 = smov 127   ;;  %v984_v2 = vmov 0.0   ;;  %v986_v3 = vmov 0   ;;  %v167_v4 = vld [vmem:[%s1530_s3] sm:$0xff]  ;;  %v1113_v12 = vld [vmem:[%s1528_s1 + $0x8] sm:$0xff] }
  0x26   :  { %s983_s14 = smov 1   ;;  %317 = vmatprep.mubr.f32.mxu0 %v984_v2  ;;  %466 = vmatprep.mubr.f32.mxu1 %v984_v2  ;;  %s985_s15 = smov 15   ;;  %v1100_v6 = vshrl.u32 %v77_v5, 7  ;;  %v1102_v7 = vand.u32 127, %v77_v5  ;;  %v1108_v11 = vld [vmem:[%s1528_s1] sm:$0xff]  ;;  %vm249_vm8 = vcmask 588800  }
  0x27   :  { %880 = vset.pattern.permute.xlu0 %v986_v3  ;;  %881 = vset.pattern.permute.xlu1 %v986_v3  ;;  %s987_s16 = smov 16   ;;  %s988_s17 = smov 17   ;;  %v1122_v14 = vld [vmem:[%s1528_s1 + $0x18] ss:$0 sm:$0xff]  ;;  %v1127_v15 = vld [vmem:[%s1528_s1 + $0x10] ss:$0 sm:$0xff] }
  0x28   :  { %v135_v10 = vsub.s32 7, %v1100_v6  ;;  %v127_v13 = vsub.s32 6, %v1100_v6  ;;  %vm216_vm0 = vcmp.lt.s32.totalorder %v1102_v7, 112  ;;  %vm223_vm1 = vcmp.lt.s32.totalorder %v1102_v7, 111 }
  0x29   :  { %214 = vrot.lane.b32.xlu1 %v1065_v1, %s979_s0  ;;  %221 = vrot.lane.b32.xlu0 %v1065_v1, %s980_s12  ;;  %vm209_vm2 = vcmp.lt.s32.totalorder %v1102_v7, 113  ;;  %v119_v20 = vsub.s32 5, %v1100_v6  ;;  %v111_v21 = vsub.s32 4, %v1100_v6  ;;  %vm202_vm3 = vcmp.lt.s32.totalorder %v1102_v7, 127 }
  0x2a   :  { %v1130_v17 = vrot.slane %v1108_v11, %v135_v10  ;;  %v1133_v18 = vrot.slane %v1113_v12, %v135_v10  ;;  %v1142_v24 = vrot.slane %v1108_v11, %v127_v13  ;;  %v1149_v27 = vrot.slane %v1113_v12, %v127_v13 }
  0x2b   :  { %v1156_v33 = vrot.slane %v1108_v11, %v119_v20  ;;  %v103_v37 = vsub.s32 3, %v1100_v6  ;;  %v1167_v40 = vrot.slane %v1113_v12, %v119_v20  ;;  %v1170_v41 = vrot.slane %v1113_v12, %v111_v21 }
  0x2c   :  { %v1173_v42 = vrot.slane %v1108_v11, %v111_v21  ;;  %vm195_vm4 = vcmp.lt.s32.totalorder %v1102_v7, 1  ;;  %v95_v52 = vsub.s32 2, %v1100_v6  ;;  %vm188_vm5 = vcmp.lt.s32.totalorder %v1102_v7, 15 }
  0x2d   :  { %207 = vrot.lane.b32.xlu1 %v1065_v1, %s981_s6  ;;  %205 = vrot.lane.b32.xlu0 %v1059_v0, %s981_s6  ;;  %v1181_v47 = vrot.slane %v1108_v11, %v103_v37  ;;  %v1184_v48 = vrot.slane %v1113_v12, %v103_v37  ;;  %v235_v51 = vmul.f32 %v1065_v1, %v1170_v41  ;;  %v87_v58 = vsub.s32 1, %v1100_v6 }
  0x2e   :  { %v234_v53 = vmul.f32 %v1059_v0, %v1173_v42  ;;  %v1202_v61 = vrot.slane %v1108_v11, %v95_v52  ;;  %v1205_v62 = vrot.slane %v1113_v12, %v95_v52  ;;  %vm181_vm6 = vcmp.lt.s32.totalorder %v1102_v7, 16 }
  0x2f   :  { %v1218_v13 = vrot.slane %v1113_v12, %v87_v58  ;;  %vm174_vm7 = vcmp.lt.s32.totalorder %v1102_v7, 17  ;;  %vm155_vm9 = vcmask 1041408   ;;  %vm149_vm10 = vcmask 1045504  }
  0x30   :  { %vm152_vm11 = vcmask 1043456   ;;  %vm600_vm12 = vcmask 441344  }
  0x31   :  { %200 = vrot.lane.b32.xlu1 %v1065_v1, %s982_s13  ;;  %198 = vrot.lane.b32.xlu0 %v1059_v0, %s982_s13 }
  0x35   :  { %193 = vrot.lane.b32.xlu1 %v1065_v1, %s983_s14  ;;  %191 = vrot.lane.b32.xlu0 %v1059_v0, %s983_s14 }
  0x39   :  { %186 = vrot.lane.b32.xlu1 %v1065_v1, %s985_s15  ;;  %184 = vrot.lane.b32.xlu0 %v1059_v0, %s985_s15 }
  0x3d   :  { %179 = vrot.lane.b32.xlu1 %v1065_v1, %s987_s16  ;;  %177 = vrot.lane.b32.xlu0 %v1059_v0, %s987_s16 }
  0x41   :  { %170 = vrot.lane.b32.xlu1 %v1065_v1, %s988_s17  ;;  %168 = vrot.lane.b32.xlu0 %v1059_v0, %s988_s17 }
  0x45   :  { %246 = vperm.xlu0 %880, %v167_v4  }
  0x97   :  { %v213_v8 = vpop.permute.xlu1 %212  ;;  %v220_v9 = vpop.permute.xlu0 %219 }
  0x9b   :  { %v215_v16 = vpop.permute.xlu1 %214  ;;  %v222_v19 = vpop.permute.xlu0 %221 }
  0x9c   :  { %v218_v22 = vsel %vm216_vm0, %v215_v16, %v213_v8  ;;  %v224_v23 = vsel %vm223_vm1, %v220_v9, %v222_v19  ;;  %v225_v25 = vsel %vm223_vm1, %v222_v19, %v220_v9  ;;  %v217_v26 = vsel %vm216_vm0, %v213_v8, %v215_v16 }
  0x9d   :  { %v243_v28 = vmul.f32 %v1122_v14, %v225_v25  ;;  %v242_v29 = vmul.f32 %v1127_v15, %v224_v23  ;;  %v241_v30 = vmul.f32 %v218_v22, %v1133_v18  ;;  %v240_v34 = vmul.f32 %v217_v26, %v1130_v17 }
  0x9e   :  { %v1213_v8 = vrot.slane %v1108_v11, %v87_v58  ;;  %v79_v16 = vsub.s32 0, %v1100_v6 }
  0x9f   :  { %v208_v31 = vpop.permute.xlu1 %207  ;;  %v206_v32 = vpop.permute.xlu0 %205  ;;  %267 = vmatprep.subr.mxu0 %v243_v28 }
  0xa0   :  { %v210_v35 = vsel %vm209_vm2, %v206_v32, %v208_v31  ;;  %v211_v36 = vsel %vm209_vm2, %v208_v31, %v206_v32  ;;  %268 = vmatpush1.msra.mxu0 %v242_v29  ;;  %v1229_v26 = vrot.slane %v1108_v11, %v79_v16  ;;  %v1232_v6 = vrot.slane %v1113_v12, %v79_v16 }
  0xa1   :  { %v238_v38 = vmul.f32 %v210_v35, %v1142_v24  ;;  %v239_v39 = vmul.f32 %v211_v36, %v1149_v27  ;;  %269 = vmatprep.subr.mxu0 %v241_v30  ;;  %v166_v35 = vld [vmem:[#allocation5] sm:$0xff] }
  0xa2   :  { %270 = vmatpush1.msra.mxu0 %v240_v34 }
  0xa3   :  { %v201_v43 = vpop.permute.xlu1 %200  ;;  %v199_v44 = vpop.permute.xlu0 %198  ;;  %271 = vmatprep.subr.mxu0 %v239_v39 }
  0xa4   :  { %v203_v45 = vsel %vm202_vm3, %v199_v44, %v201_v43  ;;  %v204_v46 = vsel %vm202_vm3, %v201_v43, %v199_v44  ;;  %272 = vmatpush1.msra.mxu0 %v238_v38  ;;  %v327_v44 = vld [vmem:[%s1532_s5] sm:$0x3f] }
  0xa5   :  { %v236_v49 = vmul.f32 %v203_v45, %v1156_v33  ;;  %v237_v50 = vmul.f32 %v204_v46, %v1167_v40 }
  0xa7   :  { %v194_v54 = vpop.permute.xlu1 %193  ;;  %v192_v55 = vpop.permute.xlu0 %191  ;;  %273 = vmatprep.subr.mxu0 %v237_v50 }
  0xa8   :  { %v196_v56 = vsel %vm195_vm4, %v192_v55, %v194_v54  ;;  %v197_v57 = vsel %vm195_vm4, %v194_v54, %v192_v55  ;;  %274 = vmatpush1.msra.mxu0 %v236_v49 }
  0xa9   :  { %v232_v59 = vmul.f32 %v197_v57, %v1181_v47  ;;  %v233_v60 = vmul.f32 %v196_v56, %v1184_v48  ;;  %275 = vmatprep.subr.mxu0 %v235_v51 }
  0xaa   :  { %276 = vmatpush1.msra.mxu0 %v234_v53 }
  0xab   :  { %v187_v63 = vpop.permute.xlu1 %186  ;;  %v185_v3 = vpop.permute.xlu0 %184  ;;  %277 = vmatprep.subr.mxu0 %v233_v60 }
  0xac   :  { %v189_v4 = vsel %vm188_vm5, %v185_v3, %v187_v63  ;;  %v190_v5 = vsel %vm188_vm5, %v187_v63, %v185_v3  ;;  %278 = vmatpush1.msra.mxu0 %v232_v59 }
  0xad   :  { %v230_v9 = vmul.f32 %v190_v5, %v1202_v61  ;;  %v231_v10 = vmul.f32 %v189_v4, %v1205_v62 }
  0xaf   :  { %v180_v19 = vpop.permute.xlu1 %179  ;;  %v178_v20 = vpop.permute.xlu0 %177  ;;  %279 = vmatprep.subr.mxu0 %v231_v10 }
  0xb0   :  { %v182_v21 = vsel %vm181_vm6, %v178_v20, %v180_v19  ;;  %v183_v22 = vsel %vm181_vm6, %v180_v19, %v178_v20  ;;  %280 = vmatpush1.msra.mxu0 %v230_v9 }
  0xb1   :  { %v228_v23 = vmul.f32 %v183_v22, %v1213_v8  ;;  %v229_v25 = vmul.f32 %v182_v21, %v1218_v13 }
  0xb3   :  { %v171_v28 = vpop.permute.xlu1 %170  ;;  %v169_v29 = vpop.permute.xlu0 %168  ;;  %281 = vmatprep.subr.mxu0 %v229_v25 }
  0xb4   :  { %v175_v30 = vsel %vm174_vm7, %v169_v29, %v171_v28  ;;  %v176_v31 = vsel %vm174_vm7, %v171_v28, %v169_v29  ;;  %282 = vmatpush1.msra.mxu0 %v228_v23 }
  0xb5   :  { %v226_v32 = vmul.f32 %v176_v31, %v1229_v26  ;;  %v227_v34 = vmul.f32 %v175_v30, %v1232_v6 }
  0xb7   :  { %283 = vmatprep.subr.mxu0 %v227_v34 }
  0xb8   :  { %284 = vmatpush1.msra.mxu0 %v226_v32 }
  0xb9   :  { %860 = vmatmul.mubr.msk.f32.vlgmr.msra.gmra.mxu0 %vm249_vm8, %v166_v35 }
  0xba   :  { %674 = vmatprep.mubr.f32.mxu0 %v984_v2 }
  0xc0   :  { %v247_v11 = vpop.permute.xlu0 %246 }
 0x179   :  { %v319_v12 = vpop.f32.mrf.mxu0 }
 0x17a   :  { %v320_v36 = vadd.f32 %v319_v12, %v247_v11 }
 0x17b   :  { %v321_v37 = vpop.f32.mrf.mxu0 }
 0x17c   :  { %v324_v38 = vmax.f32 %v320_v36, 0.0  ;;  %v322_v39 = vadd.f32 %v321_v37, %v247_v11 }
 0x17e   :  { %364 = vrot.lane.b32.xlu0 %v324_v38, %s979_s0  ;;  %370 = vrot.lane.b32.xlu1 %v324_v38, %s980_s12  ;;  %v325_v43 = vmax.f32 %v322_v39, 0.0  ;;  %v384_v31 = vmul.f32 %v324_v38, %v1173_v42 }
 0x180   :  { %v385_v28 = vmul.f32 %v325_v43, %v1170_v41 }
 0x182   :  { %358 = vrot.lane.b32.xlu0 %v324_v38, %s981_s6  ;;  %372 = vrot.lane.b32.xlu1 %v325_v43, %s980_s12 }
 0x186   :  { %352 = vrot.lane.b32.xlu0 %v324_v38, %s982_s13  ;;  %366 = vrot.lane.b32.xlu1 %v325_v43, %s979_s0 }
 0x18a   :  { %346 = vrot.lane.b32.xlu0 %v324_v38, %s983_s14  ;;  %360 = vrot.lane.b32.xlu1 %v325_v43, %s981_s6 }
 0x18e   :  { %340 = vrot.lane.b32.xlu0 %v324_v38, %s985_s15  ;;  %354 = vrot.lane.b32.xlu1 %v325_v43, %s982_s13 }
 0x192   :  { %334 = vrot.lane.b32.xlu0 %v324_v38, %s987_s16  ;;  %348 = vrot.lane.b32.xlu1 %v325_v43, %s983_s14 }
 0x196   :  { %328 = vrot.lane.b32.xlu0 %v324_v38, %s988_s17  ;;  %342 = vrot.lane.b32.xlu1 %v325_v43, %s985_s15 }
 0x19a   :  { %396 = vperm.xlu0 %880, %v327_v44   ;;  %336 = vrot.lane.b32.xlu1 %v325_v43, %s987_s16 }
 0x19e   :  { %330 = vrot.lane.b32.xlu1 %v325_v43, %s988_s17 }
 0x1f0   :  { %v365_v45 = vpop.permute.xlu0 %364  ;;  %v371_v46 = vpop.permute.xlu1 %370 }
 0x1f4   :  { %v359_v49 = vpop.permute.xlu0 %358  ;;  %v373_v50 = vpop.permute.xlu1 %372 }
 0x1f5   :  { %v374_v51 = vsel %vm223_vm1, %v371_v46, %v373_v50  ;;  %v375_v52 = vsel %vm223_vm1, %v373_v50, %v371_v46 }
 0x1f6   :  { %v393_v53 = vmul.f32 %v1122_v14, %v375_v52  ;;  %v392_v54 = vmul.f32 %v1127_v15, %v374_v51 }
 0x1f8   :  { %v353_v55 = vpop.permute.xlu0 %352  ;;  %416 = vmatprep.subr.mxu1 %v393_v53  ;;  %v367_v56 = vpop.permute.xlu1 %366 }
 0x1f9   :  { %v368_v57 = vsel %vm216_vm0, %v365_v45, %v367_v56  ;;  %v369_v58 = vsel %vm216_vm0, %v367_v56, %v365_v45  ;;  %417 = vmatpush1.msra.mxu1 %v392_v54 }
 0x1fa   :  { %v390_v59 = vmul.f32 %v368_v57, %v1130_v17  ;;  %v391_v60 = vmul.f32 %v369_v58, %v1133_v18 }
 0x1fc   :  { %418 = vmatprep.subr.mxu1 %v391_v60  ;;  %v361_v63 = vpop.permute.xlu1 %360  ;;  %v347_v5 = vpop.permute.xlu0 %346 }
 0x1fd   :  { %v362_v3 = vsel %vm209_vm2, %v359_v49, %v361_v63  ;;  %v363_v4 = vsel %vm209_vm2, %v361_v63, %v359_v49  ;;  %419 = vmatpush1.msra.mxu1 %v390_v59 }
 0x1fe   :  { %v388_v9 = vmul.f32 %v362_v3, %v1142_v24  ;;  %v389_v10 = vmul.f32 %v363_v4, %v1149_v27 }
 0x200   :  { %420 = vmatprep.subr.mxu1 %v389_v10  ;;  %v355_v16 = vpop.permute.xlu1 %354  ;;  %v341_v23 = vpop.permute.xlu0 %340 }
 0x201   :  { %v356_v19 = vsel %vm202_vm3, %v353_v55, %v355_v16  ;;  %v357_v20 = vsel %vm202_vm3, %v355_v16, %v353_v55  ;;  %421 = vmatpush1.msra.mxu1 %v388_v9  ;;  %v326_v55 = vld [vmem:[%s1531_s4] sm:$0x3f] }
 0x202   :  { %v386_v21 = vmul.f32 %v356_v19, %v1156_v33  ;;  %v387_v22 = vmul.f32 %v357_v20, %v1167_v40 }
 0x204   :  { %422 = vmatprep.subr.mxu1 %v387_v22  ;;  %v349_v25 = vpop.permute.xlu1 %348  ;;  %v335_v36 = vpop.permute.xlu0 %334 }
 0x205   :  { %v350_v29 = vsel %vm195_vm4, %v347_v5, %v349_v25  ;;  %v351_v30 = vsel %vm195_vm4, %v349_v25, %v347_v5  ;;  %423 = vmatpush1.msra.mxu1 %v386_v21  ;;  %v484_v21 = vld [vmem:[%s1534_s7] sm:$0xff] }
 0x206   :  { %v382_v32 = vmul.f32 %v351_v30, %v1181_v47  ;;  %v383_v34 = vmul.f32 %v350_v29, %v1184_v48  ;;  %424 = vmatprep.subr.mxu1 %v385_v28 }
 0x207   :  { %425 = vmatpush1.msra.mxu1 %v384_v31 }
 0x208   :  { %v343_v35 = vpop.permute.xlu1 %342  ;;  %426 = vmatprep.subr.mxu1 %v383_v34  ;;  %v329_v49 = vpop.permute.xlu0 %328 }
 0x209   :  { %v344_v11 = vsel %vm188_vm5, %v341_v23, %v343_v35  ;;  %v345_v12 = vsel %vm188_vm5, %v343_v35, %v341_v23  ;;  %427 = vmatpush1.msra.mxu1 %v382_v32 }
 0x20a   :  { %v380_v37 = vmul.f32 %v345_v12, %v1202_v61  ;;  %v381_v38 = vmul.f32 %v344_v11, %v1205_v62 }
 0x20c   :  { %v337_v39 = vpop.permute.xlu1 %336  ;;  %428 = vmatprep.subr.mxu1 %v381_v38  ;;  %v163_v38 = vsel %vm155_vm9, %v1149_v27, %v1133_v18 }
 0x20d   :  { %v338_v43 = vsel %vm181_vm6, %v335_v36, %v337_v39  ;;  %v339_v44 = vsel %vm181_vm6, %v337_v39, %v335_v36  ;;  %429 = vmatpush1.msra.mxu1 %v380_v37 }
 0x20e   :  { %v378_v45 = vmul.f32 %v339_v44, %v1213_v8  ;;  %v379_v46 = vmul.f32 %v338_v43, %v1218_v13 }
 0x210   :  { %v331_v50 = vpop.permute.xlu1 %330  ;;  %430 = vmatprep.subr.mxu1 %v379_v46 }
 0x211   :  { %v332_v51 = vsel %vm174_vm7, %v329_v49, %v331_v50  ;;  %v333_v52 = vsel %vm174_vm7, %v331_v50, %v329_v49  ;;  %431 = vmatpush1.msra.mxu1 %v378_v45 }
 0x212   :  { %v376_v53 = vmul.f32 %v333_v52, %v1229_v26  ;;  %v377_v54 = vmul.f32 %v332_v51, %v1232_v6  ;;  %v162_v51 = vsel %vm155_vm9, %v1142_v24, %v1130_v17 }
 0x214   :  { %432 = vmatprep.subr.mxu1 %v377_v54 }
 0x215   :  { %433 = vmatpush1.msra.mxu1 %v376_v53  ;;  %v397_v56 = vpop.permute.xlu0 %396 }
 0x216   :  { %861 = vmatmul.mubr.msk.f32.vlgmr.msra.gmra.mxu1 %vm249_vm8, %v326_v55 }
 0x217   :  { %823 = vmatprep.mubr.f32.mxu1 %v984_v2 }
 0x2d6   :  { %v468_v57 = vpop.f32.mrf.mxu1 }
 0x2d7   :  { %v469_v58 = vadd.f32 %v468_v57, %v397_v56 }
 0x2d8   :  { %v470_v59 = vpop.f32.mrf.mxu1 }
 0x2d9   :  { %v473_v60 = vsub.f32 0.0, %v469_v58  ;;  %v471_v63 = vadd.f32 %v470_v59, %v397_v56 }
 0x2db   :  { %v475_v3 = vmul.f32 1.442695, %v473_v60  ;;  %v474_v4 = vsub.f32 0.0, %v471_v63  ;;  %v161_v60 = vsel %vm152_vm11, %v1167_v40, %v1149_v27  ;;  %v160_v63 = vsel %vm152_vm11, %v1156_v33, %v1142_v24 }
 0x2dd   :  { %882 = vpow2.f32 %v475_v3  ;;  %v477_v5 = vmul.f32 1.442695, %v474_v4 }
 0x2df   :  { %884 = vpow2.f32 %v477_v5 }
 0x2ea   :  { %v883_v9 = vpop.eup %882 }
 0x2eb   :  { %v479_v10 = vadd.f32 1.0, %v883_v9  ;;  %v159_v9 = vsel %vm149_vm10, %v1170_v41, %v1167_v40 }
 0x2ec   :  { %v885_v16 = vpop.eup %884 }
 0x2ed   :  { %886 = vrcp.f32 %v479_v10  ;;  %v480_v19 = vadd.f32 1.0, %v885_v16 }
 0x2ef   :  { %888 = vrcp.f32 %v480_v19 }
 0x2fa   :  { %v1316_v20 = vpop.eup %886 }
 0x2fb   :  { %836 = vst [vmem:[%s1538_s11] sm:$0x3f] %v1316_v20  ;;  %515 = vrot.lane.b32.xlu1 %v1316_v20, %s981_s6 }
 0x2fc   :  { %v1324_v2 = vpop.eup %888 }
 0x2fd   :  { %837 = vst [vmem:[%s1538_s11 + $0x8] sm:$0x3f] %v1324_v2  ;;  %517 = vrot.lane.b32.xlu0 %v1324_v2, %s981_s6 }
 0x2ff   :  { %521 = vrot.lane.b32.xlu1 %v1316_v20, %s979_s0 }
 0x301   :  { %523 = vrot.lane.b32.xlu0 %v1324_v2, %s979_s0 }
 0x303   :  { %527 = vrot.lane.b32.xlu1 %v1316_v20, %s980_s12 }
 0x305   :  { %529 = vrot.lane.b32.xlu0 %v1324_v2, %s980_s12 }
 0x307   :  { %509 = vrot.lane.b32.xlu1 %v1316_v20, %s982_s13 }
 0x309   :  { %511 = vrot.lane.b32.xlu0 %v1324_v2, %s982_s13 }
 0x30b   :  { %497 = vrot.lane.b32.xlu1 %v1316_v20, %s985_s15 }
 0x30d   :  { %499 = vrot.lane.b32.xlu0 %v1324_v2, %s985_s15 }
 0x30f   :  { %503 = vrot.lane.b32.xlu1 %v1316_v20, %s983_s14 }
 0x311   :  { %505 = vrot.lane.b32.xlu0 %v1324_v2, %s983_s14 }
 0x313   :  { %491 = vrot.lane.b32.xlu1 %v1316_v20, %s987_s16 }
 0x315   :  { %493 = vrot.lane.b32.xlu0 %v1324_v2, %s987_s16 }
 0x317   :  { %485 = vrot.lane.b32.xlu1 %v1316_v20, %s988_s17 }
 0x319   :  { %487 = vrot.lane.b32.xlu0 %v1324_v2, %s988_s17 }
 0x31b   :  { %597 = vperm.xlu1 %881, %v484_v21  }
 0x36d   :  { %v516_v22 = vpop.permute.xlu1 %515 }
 0x36f   :  { %v518_v23 = vpop.permute.xlu0 %517 }
 0x370   :  { %v520_v28 = vsel %vm209_vm2, %v518_v23, %v516_v22  ;;  %v519_v30 = vsel %vm209_vm2, %v516_v22, %v518_v23  ;;  %v158_v22 = vsel %vm149_vm10, %v1173_v42, %v1156_v33 }
 0x371   :  { %v522_v25 = vpop.permute.xlu1 %521  ;;  %v560_v12 = vrot.slane %v520_v28, 4  ;;  %v559_v36 = vrot.slane %v519_v30, 4 }
 0x373   :  { %v524_v29 = vpop.permute.xlu0 %523 }
 0x374   :  { %v525_v31 = vsel %vm216_vm0, %v522_v25, %v524_v29  ;;  %v526_v32 = vsel %vm216_vm0, %v524_v29, %v522_v25 }
 0x375   :  { %v565_v34 = vrot.slane %v525_v31, 6  ;;  %v566_v35 = vrot.slane %v526_v32, 6  ;;  %v528_v11 = vpop.permute.xlu1 %527  ;;  %v157_v32 = vsel %vm155_vm9, %v1205_v62, %v1184_v48 }
 0x377   :  { %v530_v37 = vpop.permute.xlu0 %529  ;;  %v580_v44 = vsel %vm155_vm9, %v560_v12, %v566_v35  ;;  %v579_v45 = vsel %vm155_vm9, %v559_v36, %v565_v34  ;;  %v156_v34 = vsel %vm155_vm9, %v1202_v61, %v1181_v47 }
 0x378   :  { %v531_v39 = vsel %vm223_vm1, %v528_v11, %v530_v37  ;;  %v532_v43 = vsel %vm223_vm1, %v530_v37, %v528_v11  ;;  %v592_v53 = vmul.f32 %v580_v44, %v163_v38  ;;  %v591_v56 = vmul.f32 %v579_v45, %v162_v51 }
 0x379   :  { %v593_v46 = vmul.f32 %v1127_v15, %v531_v39  ;;  %v594_v49 = vmul.f32 %v1122_v14, %v532_v43  ;;  %v510_v50 = vpop.permute.xlu1 %509 }
 0x37b   :  { %v512_v52 = vpop.permute.xlu0 %511  ;;  %862 = vmatprep.subr.msk.mxu0 %vm149_vm10, %v594_v49 }
 0x37c   :  { %v513_v54 = vsel %vm202_vm3, %v510_v50, %v512_v52  ;;  %v514_v55 = vsel %vm202_vm3, %v512_v52, %v510_v50  ;;  %863 = vmatpush1.msk.msra.mxu0 %vm149_vm10, %v593_v46  ;;  %v154_v52 = vsel %vm152_vm11, %v1218_v13, %v1205_v62 }
 0x37d   :  { %v553_v57 = vrot.slane %v513_v54, 2  ;;  %v554_v58 = vrot.slane %v514_v55, 2  ;;  %630 = vmatprep.subr.mxu0 %v592_v53  ;;  %v498_v59 = vpop.permute.xlu1 %497  ;;  %v153_v53 = vsel %vm152_vm11, %v1213_v8, %v1202_v61 }
 0x37e   :  { %631 = vmatpush1.msra.mxu0 %v591_v56 }
 0x37f   :  { %v577_v3 = vsel %vm152_vm11, %v553_v57, %v559_v36  ;;  %v500_v4 = vpop.permute.xlu0 %499  ;;  %v578_v5 = vsel %vm152_vm11, %v554_v58, %v560_v12  ;;  %v576_v10 = vsel %vm149_vm10, %v1324_v2, %v554_v58  ;;  %v575_v16 = vsel %vm149_vm10, %v1316_v20, %v553_v57 }
 0x380   :  { %v590_v19 = vmul.f32 %v578_v5, %v161_v60  ;;  %v589_v21 = vmul.f32 %v577_v3, %v160_v63  ;;  %v501_v25 = vsel %vm188_vm5, %v498_v59, %v500_v4  ;;  %v502_v28 = vsel %vm188_vm5, %v500_v4, %v498_v59 }
 0x381   :  { %v504_v23 = vpop.permute.xlu1 %503  ;;  %v588_v29 = vmul.f32 %v576_v10, %v159_v9  ;;  %v587_v2 = vmul.f32 %v575_v16, %v158_v22  ;;  %v541_v35 = vrot.slane %v502_v28, 4  ;;  %v542_v11 = vrot.slane %v501_v25, 4 }
 0x382   :  { %632 = vmatprep.subr.mxu0 %v590_v19  ;;  %v150_v57 = vsel %vm149_vm10, %v1229_v26, %v1213_v8  ;;  %v151_v59 = vsel %vm149_vm10, %v1232_v6, %v1218_v13  ;;  %v483_v19 = vld [vmem:[#allocation7] sm:$0xff] }
 0x383   :  { %v506_v30 = vpop.permute.xlu0 %505  ;;  %633 = vmatpush1.msra.mxu0 %v589_v21 }
 0x384   :  { %v507_v20 = vsel %vm195_vm4, %v504_v23, %v506_v30  ;;  %v508_v31 = vsel %vm195_vm4, %v506_v30, %v504_v23  ;;  %634 = vmatprep.subr.mxu0 %v588_v29 }
 0x385   :  { %v547_v12 = vrot.slane %v508_v31, 6  ;;  %v548_v36 = vrot.slane %v507_v20, 6  ;;  %635 = vmatpush1.msra.mxu0 %v587_v2  ;;  %v492_v37 = vpop.permute.xlu1 %491  ;;  %v684_v2 = vld [vmem:[%s1536_s9] sm:$0xff] }
 0x387   :  { %v573_v38 = vsel %vm155_vm9, %v541_v35, %v547_v12  ;;  %v494_v39 = vpop.permute.xlu0 %493  ;;  %v574_v43 = vsel %vm155_vm9, %v542_v11, %v548_v36 }
 0x388   :  { %v495_v44 = vsel %vm181_vm6, %v492_v37, %v494_v39  ;;  %v496_v45 = vsel %vm181_vm6, %v494_v39, %v492_v37  ;;  %v586_v46 = vmul.f32 %v574_v43, %v157_v32  ;;  %v585_v49 = vmul.f32 %v573_v38, %v156_v34 }
 0x389   :  { %v535_v50 = vrot.slane %v496_v45, 2  ;;  %v536_v51 = vrot.slane %v495_v44, 2  ;;  %v486_v55 = vpop.permute.xlu1 %485 }
 0x38a   :  { %636 = vmatprep.subr.mxu0 %v586_v46 }
 0x38b   :  { %v571_v54 = vsel %vm152_vm11, %v535_v50, %v541_v35  ;;  %v488_v56 = vpop.permute.xlu0 %487  ;;  %637 = vmatpush1.msra.mxu0 %v585_v49  ;;  %v572_v58 = vsel %vm152_vm11, %v536_v51, %v542_v11 }
 0x38c   :  { %v489_v60 = vsel %vm174_vm7, %v486_v55, %v488_v56  ;;  %v490_v63 = vsel %vm174_vm7, %v488_v56, %v486_v55  ;;  %v584_v3 = vmul.f32 %v572_v58, %v154_v52  ;;  %v583_v4 = vmul.f32 %v571_v54, %v153_v53 }
 0x38d   :  { %v569_v5 = vsel %vm149_vm10, %v490_v63, %v535_v50  ;;  %v570_v9 = vsel %vm149_vm10, %v489_v60, %v536_v51 }
 0x38e   :  { %v581_v10 = vmul.f32 %v569_v5, %v150_v57  ;;  %638 = vmatprep.subr.mxu0 %v584_v3  ;;  %v582_v16 = vmul.f32 %v570_v9, %v151_v59 }
 0x38f   :  { %639 = vmatpush1.msra.mxu0 %v583_v4 }
 0x390   :  { %640 = vmatprep.subr.mxu0 %v582_v16 }
 0x391   :  { %641 = vmatpush1.msra.mxu0 %v581_v10 }
 0x392   :  { %864 = vmatmul.mubr.msk.f32.vlgmr.msra.gmra.mxu0 %vm600_vm12, %v483_v19 }
 0x396   :  { %v598_v21 = vpop.permute.xlu1 %597 }
 0x452   :  { %v676_v22 = vpop.f32.mrf.mxu0 }
 0x453   :  { %v677_v23 = vadd.f32 %v676_v22, %v598_v21 }
 0x454   :  { %v678_v25 = vpop.f32.mrf.mxu0 }
 0x455   :  { %v681_v28 = vmax.f32 %v677_v23, 0.0  ;;  %v679_v29 = vadd.f32 %v678_v25, %v598_v21 }
 0x457   :  { %v682_v30 = vmax.f32 %v679_v29, 0.0  ;;  %727 = vrot.lane.b32.xlu0 %v681_v28, %s980_s12  ;;  %v741_v57 = vmul.f32 %v681_v28, %v1173_v42 }
 0x459   :  { %729 = vrot.lane.b32.xlu1 %v682_v30, %s980_s12 }
 0x45b   :  { %721 = vrot.lane.b32.xlu0 %v681_v28, %s979_s0 }
 0x45d   :  { %723 = vrot.lane.b32.xlu1 %v682_v30, %s979_s0 }
 0x45f   :  { %715 = vrot.lane.b32.xlu0 %v681_v28, %s981_s6 }
 0x461   :  { %717 = vrot.lane.b32.xlu1 %v682_v30, %s981_s6  ;;  %s989_s6 = smov [#allocation8]  }
 0x463   :  { %709 = vrot.lane.b32.xlu0 %v681_v28, %s982_s13 }
 0x465   :  { %711 = vrot.lane.b32.xlu1 %v682_v30, %s982_s13  ;;  %s844_s13 = sshll.u32 %s989_s6, 4  ;;  %s845_s13 = int_to_ptr.vmem [resolvable:$true] %s844_s13 }
 0x466   :  { %p955_p2 = scmp.lt.s32.totalorder %s845_s13, %s845_s13 }
 0x467   :  { %703 = vrot.lane.b32.xlu0 %v681_v28, %s983_s14 }
 0x469   :  { %705 = vrot.lane.b32.xlu1 %v682_v30, %s983_s14 }
 0x46b   :  { %697 = vrot.lane.b32.xlu0 %v681_v28, %s985_s15 }
 0x46d   :  { %699 = vrot.lane.b32.xlu1 %v682_v30, %s985_s15 }
 0x46f   :  { %691 = vrot.lane.b32.xlu0 %v681_v28, %s987_s16 }
 0x471   :  { %693 = vrot.lane.b32.xlu1 %v682_v30, %s987_s16 }
 0x473   :  { %685 = vrot.lane.b32.xlu0 %v681_v28, %s988_s17 }
 0x475   :  { %687 = vrot.lane.b32.xlu1 %v682_v30, %s988_s17 }
 0x477   :  { %753 = vperm.xlu0 %880, %v684_v2  }
 0x4c9   :  { %v728_v20 = vpop.permute.xlu0 %727 }
 0x4cb   :  { %v730_v31 = vpop.permute.xlu1 %729 }
 0x4cc   :  { %v731_v32 = vsel %vm223_vm1, %v728_v20, %v730_v31  ;;  %v732_v34 = vsel %vm223_vm1, %v730_v31, %v728_v20 }
 0x4cd   :  { %v749_v35 = vmul.f32 %v1127_v15, %v731_v32  ;;  %v750_v11 = vmul.f32 %v1122_v14, %v732_v34  ;;  %v722_v12 = vpop.permute.xlu0 %721 }
 0x4cf   :  { %v724_v36 = vpop.permute.xlu1 %723  ;;  %773 = vmatprep.subr.mxu1 %v750_v11 }
 0x4d0   :  { %v725_v37 = vsel %vm216_vm0, %v722_v12, %v724_v36  ;;  %v726_v38 = vsel %vm216_vm0, %v724_v36, %v722_v12  ;;  %774 = vmatpush1.msra.mxu1 %v749_v35 }
 0x4d1   :  { %v747_v39 = vmul.f32 %v725_v37, %v1130_v17  ;;  %v748_v43 = vmul.f32 %v726_v38, %v1133_v18  ;;  %v716_v44 = vpop.permute.xlu0 %715 }
 0x4d3   :  { %v718_v45 = vpop.permute.xlu1 %717  ;;  %775 = vmatprep.subr.mxu1 %v748_v43 }
 0x4d4   :  { %v719_v14 = vsel %vm209_vm2, %v716_v44, %v718_v45  ;;  %v720_v15 = vsel %vm209_vm2, %v718_v45, %v716_v44  ;;  %776 = vmatpush1.msra.mxu1 %v747_v39 }
 0x4d5   :  { %v745_v46 = vmul.f32 %v719_v14, %v1142_v24  ;;  %v746_v49 = vmul.f32 %v720_v15, %v1149_v27  ;;  %v710_v50 = vpop.permute.xlu0 %709  ;;  %v742_v24 = vmul.f32 %v682_v30, %v1170_v41 }
 0x4d7   :  { %v712_v51 = vpop.permute.xlu1 %711  ;;  %777 = vmatprep.subr.mxu1 %v746_v49 }
 0x4d8   :  { %v713_v17 = vsel %vm202_vm3, %v710_v50, %v712_v51  ;;  %v714_v18 = vsel %vm202_vm3, %v712_v51, %v710_v50  ;;  %778 = vmatpush1.msra.mxu1 %v745_v46 }
 0x4d9   :  { %v743_v52 = vmul.f32 %v713_v17, %v1156_v33  ;;  %v744_v53 = vmul.f32 %v714_v18, %v1167_v40  ;;  %v704_v54 = vpop.permute.xlu0 %703 }
 0x4db   :  { %v706_v55 = vpop.permute.xlu1 %705  ;;  %779 = vmatprep.subr.mxu1 %v744_v53 }
 0x4dc   :  { %v707_v27 = vsel %vm195_vm4, %v704_v54, %v706_v55  ;;  %v708_v56 = vsel %vm195_vm4, %v706_v55, %v704_v54  ;;  %780 = vmatpush1.msra.mxu1 %v743_v52 }
 0x4dd   :  { %v739_v58 = vmul.f32 %v708_v56, %v1181_v47  ;;  %v740_v33 = vmul.f32 %v707_v27, %v1184_v48  ;;  %781 = vmatprep.subr.mxu1 %v742_v24  ;;  %v698_v40 = vpop.permute.xlu0 %697 }
 0x4de   :  { %782 = vmatpush1.msra.mxu1 %v741_v57 }
 0x4df   :  { %v700_v59 = vpop.permute.xlu1 %699  ;;  %783 = vmatprep.subr.mxu1 %v740_v33 }
 0x4e0   :  { %v701_v41 = vsel %vm188_vm5, %v698_v40, %v700_v59  ;;  %v702_v60 = vsel %vm188_vm5, %v700_v59, %v698_v40  ;;  %784 = vmatpush1.msra.mxu1 %v739_v58 }
 0x4e1   :  { %v737_v63 = vmul.f32 %v702_v60, %v1202_v61  ;;  %v738_v42 = vmul.f32 %v701_v41, %v1205_v62  ;;  %v692_v3 = vpop.permute.xlu0 %691 }
 0x4e3   :  { %v694_v47 = vpop.permute.xlu1 %693  ;;  %785 = vmatprep.subr.mxu1 %v738_v42 }
 0x4e4   :  { %v695_v48 = vsel %vm181_vm6, %v692_v3, %v694_v47  ;;  %v696_v4 = vsel %vm181_vm6, %v694_v47, %v692_v3  ;;  %786 = vmatpush1.msra.mxu1 %v737_v63 }
 0x4e5   :  { %v735_v5 = vmul.f32 %v696_v4, %v1213_v8  ;;  %v736_v9 = vmul.f32 %v695_v48, %v1218_v13  ;;  %v686_v10 = vpop.permute.xlu0 %685  ;;  %v683_v8 = vld [vmem:[%s1535_s8] sm:$0xff]  ;;  %s950_s8 = scalar_lea.vmem %s845_s13, 256 }
 0x4e6   :  { %p951_p1 = scmp.ne.s32.totalorder %s845_s13, %s950_s8  ;;  %p956_p3 = scmp.lt.s32.totalorder %s950_s8, %s950_s8 }
 0x4e7   :  { %v688_v16 = vpop.permute.xlu1 %687  ;;  %787 = vmatprep.subr.mxu1 %v736_v9 }
 0x4e8   :  { %v689_v61 = vsel %vm174_vm7, %v686_v10, %v688_v16  ;;  %v690_v62 = vsel %vm174_vm7, %v688_v16, %v686_v10  ;;  %788 = vmatpush1.msra.mxu1 %v735_v5  ;;  %p957_p4 = por %p956_p3, %p955_p2 }
 0x4e9   :  { %v733_v19 = vmul.f32 %v690_v62, %v1229_v26  ;;  %v734_v21 = vmul.f32 %v689_v61, %v1232_v6 }
 0x4ea   :  { %p958_p5 = pnand %p957_p4, %p951_p1 }
 0x4eb   :  { %789 = vmatprep.subr.mxu1 %v734_v21 }
 0x4ec   :  { %790 = vmatpush1.msra.mxu1 %v733_v19 }
 0x4ed   :  { %865 = vmatmul.mubr.msk.f32.vlgmr.msra.gmra.mxu1 %vm249_vm8, %v683_v8 }
 0x4f2   :  { %v754_v13 = vpop.permute.xlu0 %753 }
 0x5ad   :  { %v825_v22 = vpop.f32.mrf.mxu1 }
 0x5ae   :  { %v826_v23 = vadd.f32 %v825_v22, %v754_v13 }
 0x5af   :  { %v827_v25 = vpop.f32.mrf.mxu1 }
 0x5b0   :  { %v830_v28 = vmax.f32 %v826_v23, 0.0  ;;  %v828_v7 = vadd.f32 %v827_v25, %v754_v13 }
 0x5b2   :  { %v832_v26 = vadd.f32 %v830_v28, %v1059_v0  ;;  %v831_v29 = vmax.f32 %v828_v7, 0.0 }
 0x5b4   :  { %834 = vst [vmem:[#allocation8] sm:$0xff] %v832_v26  ;;  %v833_v6 = vadd.f32 %v831_v29, %v1065_v1 }
 0x5b6   :  { %835 = vst [vmem:[#allocation8 + $0x8] sm:$0xff] %v833_v6 }
 0x5b7   :  { %961 = shalt.err (!%p958_p5)
}
 0x5b8   :  { %847 = dma.vmem_to_hbm [thread:$0]  %s845_s13, 256, %s1537_s10, [#allocation4]  }
 0x5b9   :  { %974 = dma.done.wait [#allocation4], 256  }
 0x5ba   :  { %975 = vsyncadd [#allocation4], 4294967040 }
 0x5bb   :  { %855 = vsyncpa [#allocation3], 1 }
 0x5bc   :  { %856 = vsyncpa [#allocation6], 1 }
 0x5bd   :  { %857 = vsyncpa [#allocation4], 1 }

</bundles_post_ra>
